<compile_context>
chip_gen: v5e
topology: v5e:2x2
jax: 0.10.0
libtpu: 0.0.40
codegen_flags: <defaults>
</compile_context>

<pallas_src>
import functools
import math

import jax
import jax.numpy as jnp
from jax import lax
from jax.experimental import pallas as pl
from jax.experimental.pallas import tpu as pltpu

LANES = 128
CHUNK_ROWS = 32              # (32,128) chunk: aligned for f32(8,), bf16(16,), int8/uint8(32,) tiling
OUT_SUBLANES = 8             # per-tile partials folded to a single (8,128) f32 vreg each
BLOCK_BYTES_TARGET = 4 * 1024 * 1024   # ~4 MiB per input per grid step
_DIRECT_DTYPES = (jnp.float32, jnp.bfloat16, jnp.int8, jnp.uint8)


def _ddice_stats_kernel(x_ref, t_ref, out_ref, *,
                        n_tiles, n_sub_full, n_sub_last, rem_valid):
    """Writes per-tile partial stats [sum_x, sum_t, sum_x*t, max_x], each (8,128) f32."""
    i = pl.program_id(0)

    def load_chunk(row0):
        xs = x_ref[pl.ds(row0, CHUNK_ROWS), :].astype(jnp.float32)
        ts = t_ref[pl.ds(row0, CHUNK_ROWS), :].astype(jnp.float32)
        return xs, ts

    def chunk_loop(n_chunks):
        zeros = jnp.zeros((CHUNK_ROWS, LANES), jnp.float32)
        init = (zeros, zeros, zeros,
                jnp.full((CHUNK_ROWS, LANES), -jnp.inf, jnp.float32))
        if n_chunks <= 0:                       # static
            return init

        def body(j, carry):
            sx, st, sxt, mx = carry
            r = pl.multiple_of(j * CHUNK_ROWS, CHUNK_ROWS)
            xs, ts = load_chunk(r)
            return (sx + xs, st + ts, sxt + xs * ts, jnp.maximum(mx, xs))

        return lax.fori_loop(0, n_chunks, body, init, unroll=2)

    def write(sx, st, sxt, mx):
        # Fold (32,128) accumulators down to (8,128) before the HBM writeback
        # (cuts the per-tile output 4x; a handful of extra vadd/vmax).
        def fold(v, op):
            r = v[0:OUT_SUBLANES]
            for k in range(1, CHUNK_ROWS // OUT_SUBLANES):
                r = op(r, v[k * OUT_SUBLANES:(k + 1) * OUT_SUBLANES])
            return r

        out_ref[0, 0, :, :] = fold(sx, jnp.add)
        out_ref[0, 1, :, :] = fold(st, jnp.add)
        out_ref[0, 2, :, :] = fold(sxt, jnp.add)
        out_ref[0, 3, :, :] = fold(mx, jnp.maximum)

    if n_tiles > 1:
        @pl.when(i < n_tiles - 1)
        def _full_tiles():
            write(*chunk_loop(n_sub_full))

    @pl.when(i == n_tiles - 1)
    def _last_tile():
        # Every chunk of the last tile except the final one is fully valid.
        sx, st, sxt, mx = chunk_loop(n_sub_last - 1)
        row0 = (n_sub_last - 1) * CHUNK_ROWS                       # static
        xs, ts = load_chunk(row0)
        if rem_valid < CHUNK_ROWS * LANES:                         # static
            # No wrapper padding: the tail of this chunk is stale VMEM, so it
            # must be excluded from the sums as well as from the max.
            rr = lax.broadcasted_iota(jnp.int32, (CHUNK_ROWS, LANES), 0)
            cc = lax.broadcasted_iota(jnp.int32, (CHUNK_ROWS, LANES), 1)
            valid = (rr * LANES + cc) < rem_valid
            xs_s = jnp.where(valid, xs, 0.0)
            ts_s = jnp.where(valid, ts, 0.0)
            mx = jnp.maximum(mx, jnp.where(valid, xs, -jnp.inf))
        else:
            xs_s, ts_s = xs, ts
            mx = jnp.maximum(mx, xs)
        write(sx + xs_s, st + ts_s, sxt + xs_s * ts_s, mx)


def _prep(arr):
    """Flatten; stream 1/2/4-byte dtypes directly (kernel upcasts per chunk)."""
    if arr.dtype == jnp.bool_:
        arr = arr.astype(jnp.uint8)        # 1-byte cast (i1 refs are awkward on Mosaic)
    elif arr.dtype not in _DIRECT_DTYPES:
        arr = arr.astype(jnp.float32)      # rare fallback (f16 / wide ints / f64)
    return arr.reshape(-1)


@functools.partial(jax.jit, static_argnames=("smooth", "weight_tissue"))
def double_dice_loss(inputs, targets, smooth=1.0, weight_tissue="balanced"):
    assert inputs.shape == targets.shape
    n = math.prod(inputs.shape)
    if n == 0:
        # Reference would divide by numel()==0 / take max of an empty tensor.
        return jnp.asarray(jnp.nan, jnp.float32)

    x = _prep(inputs)
    t = _prep(targets)

    # Lane alignment: numel % 128 == 0 (typical NCHW segmentation shapes) is
    # completely copy-free; otherwise pad only up to the next lane multiple
    # (<= 127 elements; the padded tail is masked out in-kernel anyway).
    rem_lane = n % LANES
    if rem_lane:
        x = jnp.pad(x, (0, LANES - rem_lane))
        t = jnp.pad(t, (0, LANES - rem_lane))
    rows = x.shape[0] // LANES
    x2 = x.reshape(rows, LANES)
    t2 = t.reshape(rows, LANES)

    # ~4 MiB per input per grid step (dtype-aware), clamped to the array size.
    max_bpe = max(x2.dtype.itemsize, t2.dtype.itemsize)
    cap = max(CHUNK_ROWS,
              (BLOCK_BYTES_TARGET // (LANES * max_bpe)) // CHUNK_ROWS * CHUNK_ROWS)
    rows_ceil = int(pl.cdiv(rows, CHUNK_ROWS)) * CHUNK_ROWS
    tile_rows = min(cap, rows_ceil)                       # multiple of CHUNK_ROWS

    n_tiles = int(pl.cdiv(rows, tile_rows))
    rows_last = rows - (n_tiles - 1) * tile_rows          # 1 .. tile_rows
    n_sub_full = tile_rows // CHUNK_ROWS
    n_sub_last = int(pl.cdiv(rows_last, CHUNK_ROWS))      # >= 1
    last_chunk_base = ((n_tiles - 1) * tile_rows + (n_sub_last - 1) * CHUNK_ROWS) * LANES
    rem_valid = n - last_chunk_base                       # in (0, CHUNK_ROWS*LANES]

    kernel = functools.partial(
        _ddice_stats_kernel,
        n_tiles=n_tiles, n_sub_full=n_sub_full,
        n_sub_last=n_sub_last, rem_valid=int(rem_valid))

    cost = pl.CostEstimate(
        flops=5 * n, transcendentals=0,
        bytes_accessed=rows * LANES * (x2.dtype.itemsize + t2.dtype.itemsize)
                       + n_tiles * 4 * OUT_SUBLANES * LANES * 4)

    parts = pl.pallas_call(
        kernel,
        out_shape=jax.ShapeDtypeStruct((n_tiles, 4, OUT_SUBLANES, LANES), jnp.float32),
        grid=(n_tiles,),
        in_specs=[
            pl.BlockSpec((tile_rows, LANES), lambda i: (i, 0)),
            pl.BlockSpec((tile_rows, LANES), lambda i: (i, 0)),
        ],
        out_specs=pl.BlockSpec((1, 4, OUT_SUBLANES, LANES), lambda i: (i, 0, 0, 0)),
        compiler_params=pltpu.CompilerParams(
            # Independent per-tile partials -> grid axis is truly parallel
            # (lets v7x's two TensorCores each stream half the tiles).
            dimension_semantics=("parallel",),
            # Worst case 2 inputs x 2 pipeline buffers x 4 MiB = 16 MiB of
            # input blocks: raise v5e's 16 MiB default, matches the v6e/v7x
            # default, well inside v7x's 64 MiB physical VMEM.
            vmem_limit_bytes=32 * 1024 * 1024),
        cost_estimate=cost,
    )(x2, t2)

    # Scalar glue (tiny).  Runs in f64 when x64 is enabled, else f32.
    # NOTE: in pure f32 the algebraic reconstruction of the inverted-image
    # sums (n*mx - sum_x, ...) can lose precision for very large n (~1e8+)
    # with values near mx; the per-lane partial accumulation itself is fine.
    ftype = jax.dtypes.canonicalize_dtype(jnp.float64)
    sum_x = jnp.sum(parts[:, 0], dtype=ftype)
    sum_t = jnp.sum(parts[:, 1], dtype=ftype)
    sum_xt = jnp.sum(parts[:, 2], dtype=ftype)
    mx = jnp.max(parts[:, 3]).astype(ftype)
    nf = jnp.asarray(n, ftype)

    sum_ix = nf * mx - sum_x
    sum_it = nf * mx - sum_t
    sum_ixit = mx * (nf * mx - (sum_x + sum_t)) + sum_xt

    if weight_tissue == "balanced":
        w = sum_t / nf                          # targets.sum() / targets.numel()
    else:
        w = jnp.asarray(weight_tissue, ftype)

    s = jnp.asarray(smooth, ftype)
    loss1 = 1.0 - (2.0 * sum_xt + s) / (sum_x + sum_t + s)
    loss2 = 1.0 - (2.0 * sum_ixit + s) / (sum_ix + sum_it + s)
    return (w * loss1 + (1.0 - w) * loss2).astype(jnp.float32)


def _reference_double_dice(inputs, targets, smooth=1.0):
    """Pure-JAX reference mirroring the PyTorch module exactly."""
    xf = inputs.reshape(-1).astype(jnp.float32)
    tf = targets.reshape(-1).astype(jnp.float32)
    w = tf.sum() / tf.size
    mx = xf.max()
    ix = -xf + mx
    it = -tf + mx

    def dice_loss(a, b):
        inter = (a * b).sum()
        return 1.0 - (2.0 * inter + smooth) / (a.sum() + b.sum() + smooth)

    return w * dice_loss(xf, tf) + (1.0 - w) * dice_loss(ix, it)


if __name__ == "__main__":
    key = jax.random.PRNGKey(0)
    k1, k2, k3, k4 = jax.random.split(key, 4)

    # 1) Aligned NCHW probabilities + binary f32 mask (zero-copy kernel path,
    #    partially valid final block masked in-kernel).
    inputs = jax.random.uniform(k1, (2, 4, 16, 16), dtype=jnp.float32)
    targets = (jax.random.uniform(k2, (2, 4, 16, 16)) > 0.7).astype(jnp.float32)
    loss = jax.block_until_ready(double_dice_loss(inputs, targets, smooth=1.0))
    ref = jax.block_until_ready(_reference_double_dice(inputs, targets, 1.0))
    assert jnp.allclose(loss, ref, rtol=1e-5, atol=1e-6), (loss, ref)

    # 2) Lane-unaligned shape with an int8 mask streamed directly from HBM
    #    (minimal lane pad + in-kernel tail masking + mixed input dtypes).
    inputs2 = jax.random.uniform(k3, (2, 3, 13, 13), dtype=jnp.float32)
    targets2 = (jax.random.uniform(k4, (2, 3, 13, 13)) > 0.5).astype(jnp.int8)
    loss2 = jax.block_until_ready(double_dice_loss(inputs2, targets2, smooth=1.0))
    ref2 = jax.block_until_ready(_reference_double_dice(inputs2, targets2, 1.0))
    assert jnp.allclose(loss2, ref2, rtol=1e-5, atol=1e-6), (loss2, ref2)

    print("KERNEL_OK")
</pallas_src>

<mosaic_0001>
module attributes {stable_mosaic.version = 11 : i64} {
  func.func @_ddice_stats_kernel(%arg0: i32, %arg1: memref<32x128xf32, #tpu.memory_space<vmem>>, %arg2: memref<32x128xf32, #tpu.memory_space<vmem>>, %arg3: memref<1x4x8x128xf32, #tpu.memory_space<vmem>>) attributes {dimension_semantics = [#tpu.dimension_semantics<parallel>], iteration_bounds = array<i64: 1>, scalar_prefetch = 0 : i64, scratch_operands = 0 : i64, tpu.core_type = #tpu.core_type<tc>, window_params = [{transform_indices = @transform_0, window_bounds = array<i64: 32, 128>}, {transform_indices = @transform_1, window_bounds = array<i64: 32, 128>}, {transform_indices = @transform_2, window_bounds = array<i64: 1, 4, 8, 128>}]} {
    %c0_i32 = arith.constant 0 : i32
    %0 = arith.cmpi eq, %arg0, %c0_i32 : i32
    %1 = arith.extui %0 : i1 to i32
    %c0_i32_0 = arith.constant 0 : i32
    %2 = arith.cmpi ne, %1, %c0_i32_0 : i32
    scf.if %2 {
      %cst = arith.constant 0.000000e+00 : f32
      %3 = vector.broadcast %cst : f32 to vector<32x128xf32>
      %cst_1 = arith.constant 0xFF800000 : f32
      %4 = vector.broadcast %cst_1 : f32 to vector<32x128xf32>
      %c0 = arith.constant 0 : index
      %c0_2 = arith.constant 0 : index
      %5 = vector.load %arg1[%c0, %c0_2] : memref<32x128xf32, #tpu.memory_space<vmem>>, vector<32x128xf32>
      %c0_3 = arith.constant 0 : index
      %c0_4 = arith.constant 0 : index
      %6 = vector.load %arg2[%c0_3, %c0_4] : memref<32x128xf32, #tpu.memory_space<vmem>>, vector<32x128xf32>
      %7 = tpu.iota {dimensions = array<i32: 0>} : vector<32x128xi32>
      %8 = tpu.iota {dimensions = array<i32: 1>} : vector<32x128xi32>
      %c128_i32 = arith.constant 128 : i32
      %9 = vector.broadcast %c128_i32 : i32 to vector<32x128xi32>
      %10 = arith.muli %7, %9 : vector<32x128xi32>
      %11 = arith.addi %10, %8 : vector<32x128xi32>
      %c2048_i32 = arith.constant 2048 : i32
      %12 = vector.broadcast %c2048_i32 : i32 to vector<32x128xi32>
      %13 = arith.cmpi slt, %11, %12 : vector<32x128xi32>
      %cst_5 = arith.constant 0.000000e+00 : f32
      %14 = vector.broadcast %cst_5 : f32 to vector<32x128xf32>
      %15 = arith.select %13, %5, %14 : vector<32x128xi1>, vector<32x128xf32>
      %cst_6 = arith.constant 0.000000e+00 : f32
      %16 = vector.broadcast %cst_6 : f32 to vector<32x128xf32>
      %17 = arith.select %13, %6, %16 : vector<32x128xi1>, vector<32x128xf32>
      %cst_7 = arith.constant 0xFF800000 : f32
      %18 = vector.broadcast %cst_7 : f32 to vector<32x128xf32>
      %19 = arith.select %13, %5, %18 : vector<32x128xi1>, vector<32x128xf32>
      %20 = arith.maximumf %4, %19 : vector<32x128xf32>
      %21 = arith.addf %3, %15 : vector<32x128xf32>
      %22 = arith.addf %3, %17 : vector<32x128xf32>
      %23 = arith.mulf %15, %17 : vector<32x128xf32>
      %24 = arith.addf %3, %23 : vector<32x128xf32>
      %25 = vector.extract_strided_slice %21 {offsets = [0, 0], sizes = [8, 128], strides = [1, 1]} : vector<32x128xf32> to vector<8x128xf32>
      %26 = vector.extract_strided_slice %21 {offsets = [8, 0], sizes = [8, 128], strides = [1, 1]} : vector<32x128xf32> to vector<8x128xf32>
      %27 = arith.addf %25, %26 : vector<8x128xf32>
      %28 = vector.extract_strided_slice %21 {offsets = [16, 0], sizes = [8, 128], strides = [1, 1]} : vector<32x128xf32> to vector<8x128xf32>
      %29 = arith.addf %27, %28 : vector<8x128xf32>
      %30 = vector.extract_strided_slice %21 {offsets = [24, 0], sizes = [8, 128], strides = [1, 1]} : vector<32x128xf32> to vector<8x128xf32>
      %31 = arith.addf %29, %30 : vector<8x128xf32>
      %c0_8 = arith.constant 0 : index
      %c0_9 = arith.constant 0 : index
      %c0_10 = arith.constant 0 : index
      %c0_11 = arith.constant 0 : index
      %32 = vector.load %arg3[%c0_8, %c0_9, %c0_10, %c0_11] : memref<1x4x8x128xf32, #tpu.memory_space<vmem>>, vector<1x1x8x128xf32>
      %33 = vector.shape_cast %32 : vector<1x1x8x128xf32> to vector<8x128xf32>
      %34 = vector.shape_cast %31 : vector<8x128xf32> to vector<1x1x8x128xf32>
      tpu.vector_store %arg3[%c0_8, %c0_9, %c0_10, %c0_11], %34 {strides = array<i32>} : memref<1x4x8x128xf32, #tpu.memory_space<vmem>>, vector<1x1x8x128xf32>,
      %35 = vector.extract_strided_slice %22 {offsets = [0, 0], sizes = [8, 128], strides = [1, 1]} : vector<32x128xf32> to vector<8x128xf32>
      %36 = vector.extract_strided_slice %22 {offsets = [8, 0], sizes = [8, 128], strides = [1, 1]} : vector<32x128xf32> to vector<8x128xf32>
      %37 = arith.addf %35, %36 : vector<8x128xf32>
      %38 = vector.extract_strided_slice %22 {offsets = [16, 0], sizes = [8, 128], strides = [1, 1]} : vector<32x128xf32> to vector<8x128xf32>
      %39 = arith.addf %37, %38 : vector<8x128xf32>
      %40 = vector.extract_strided_slice %22 {offsets = [24, 0], sizes = [8, 128], strides = [1, 1]} : vector<32x128xf32> to vector<8x128xf32>
      %41 = arith.addf %39, %40 : vector<8x128xf32>
      %c0_12 = arith.constant 0 : index
      %c1 = arith.constant 1 : index
      %c0_13 = arith.constant 0 : index
      %c0_14 = arith.constant 0 : index
      %42 = vector.load %arg3[%c0_12, %c1, %c0_13, %c0_14] : memref<1x4x8x128xf32, #tpu.memory_space<vmem>>, vector<1x1x8x128xf32>
      %43 = vector.shape_cast %42 : vector<1x1x8x128xf32> to vector<8x128xf32>
      %44 = vector.shape_cast %41 : vector<8x128xf32> to vector<1x1x8x128xf32>
      tpu.vector_store %arg3[%c0_12, %c1, %c0_13, %c0_14], %44 {strides = array<i32>} : memref<1x4x8x128xf32, #tpu.memory_space<vmem>>, vector<1x1x8x128xf32>,
      %45 = vector.extract_strided_slice %24 {offsets = [0, 0], sizes = [8, 128], strides = [1, 1]} : vector<32x128xf32> to vector<8x128xf32>
      %46 = vector.extract_strided_slice %24 {offsets = [8, 0], sizes = [8, 128], strides = [1, 1]} : vector<32x128xf32> to vector<8x128xf32>
      %47 = arith.addf %45, %46 : vector<8x128xf32>
      %48 = vector.extract_strided_slice %24 {offsets = [16, 0], sizes = [8, 128], strides = [1, 1]} : vector<32x128xf32> to vector<8x128xf32>
      %49 = arith.addf %47, %48 : vector<8x128xf32>
      %50 = vector.extract_strided_slice %24 {offsets = [24, 0], sizes = [8, 128], strides = [1, 1]} : vector<32x128xf32> to vector<8x128xf32>
      %51 = arith.addf %49, %50 : vector<8x128xf32>
      %c0_15 = arith.constant 0 : index
      %c2 = arith.constant 2 : index
      %c0_16 = arith.constant 0 : index
      %c0_17 = arith.constant 0 : index
      %52 = vector.load %arg3[%c0_15, %c2, %c0_16, %c0_17] : memref<1x4x8x128xf32, #tpu.memory_space<vmem>>, vector<1x1x8x128xf32>
      %53 = vector.shape_cast %52 : vector<1x1x8x128xf32> to vector<8x128xf32>
      %54 = vector.shape_cast %51 : vector<8x128xf32> to vector<1x1x8x128xf32>
      tpu.vector_store %arg3[%c0_15, %c2, %c0_16, %c0_17], %54 {strides = array<i32>} : memref<1x4x8x128xf32, #tpu.memory_space<vmem>>, vector<1x1x8x128xf32>,
      %55 = vector.extract_strided_slice %20 {offsets = [0, 0], sizes = [8, 128], strides = [1, 1]} : vector<32x128xf32> to vector<8x128xf32>
      %56 = vector.extract_strided_slice %20 {offsets = [8, 0], sizes = [8, 128], strides = [1, 1]} : vector<32x128xf32> to vector<8x128xf32>
      %57 = arith.maximumf %55, %56 : vector<8x128xf32>
      %58 = vector.extract_strided_slice %20 {offsets = [16, 0], sizes = [8, 128], strides = [1, 1]} : vector<32x128xf32> to vector<8x128xf32>
      %59 = arith.maximumf %57, %58 : vector<8x128xf32>
      %60 = vector.extract_strided_slice %20 {offsets = [24, 0], sizes = [8, 128], strides = [1, 1]} : vector<32x128xf32> to vector<8x128xf32>
      %61 = arith.maximumf %59, %60 : vector<8x128xf32>
      %c0_18 = arith.constant 0 : index
      %c3 = arith.constant 3 : index
      %c0_19 = arith.constant 0 : index
      %c0_20 = arith.constant 0 : index
      %62 = vector.load %arg3[%c0_18, %c3, %c0_19, %c0_20] : memref<1x4x8x128xf32, #tpu.memory_space<vmem>>, vector<1x1x8x128xf32>
      %63 = vector.shape_cast %62 : vector<1x1x8x128xf32> to vector<8x128xf32>
      %64 = vector.shape_cast %61 : vector<8x128xf32> to vector<1x1x8x128xf32>
      tpu.vector_store %arg3[%c0_18, %c3, %c0_19, %c0_20], %64 {strides = array<i32>} : memref<1x4x8x128xf32, #tpu.memory_space<vmem>>, vector<1x1x8x128xf32>,
    } else {
    }
    return
  }
  func.func @transform_0(%arg0: i32) -> (i32, i32) {
    %c0_i32 = arith.constant 0 : i32
    %c0_i32_0 = arith.constant 0 : i32
    return %arg0, %c0_i32 : i32, i32
  }
  func.func @transform_1(%arg0: i32) -> (i32, i32) {
    %c0_i32 = arith.constant 0 : i32
    %c0_i32_0 = arith.constant 0 : i32
    return %arg0, %c0_i32 : i32, i32
  }
  func.func @transform_2(%arg0: i32) -> (i32, i32, i32, i32) {
    %c0_i32 = arith.constant 0 : i32
    %c0_i32_0 = arith.constant 0 : i32
    %c0_i32_1 = arith.constant 0 : i32
    %c0_i32_2 = arith.constant 0 : i32
    return %arg0, %c0_i32, %c0_i32_0, %c0_i32_1 : i32, i32, i32, i32
  }
}

</mosaic_0001>

<bundles_post_ra>
// kernel: double_dice_loss.1
= control target key start
LH: loop header
LB: loop body
LE: loop exit
PB: predicated region body
PF: predicated region fallthrough
CT: control target
= control target key end

     0   :  { %v23_v0 = vlaneseq  ;;  %s153_s0 = inlined_call_operand.vmem [shape: f32[16,128], index: 0, kind: input, shape index: {}]   ;;  %s154_s1 = inlined_call_operand.vmem [shape: f32[16,128], index: 1, kind: input, shape index: {}]   ;;  %s155_s2 = inlined_call_operand.vmem [shape: f32[1,4,8,128], index: 2, kind: output, shape index: {}]  }
   0x1   :  { %v15_v7 = vld [vmem:[%s153_s0] sm:$0xff]  ;;  %v16_v13 = vld [vmem:[%s153_s0 + $0x8] sm:$0xff]  ;;  %v17_v14 = vld [vmem:[%s153_s0 + $0x10] sm:$0xff] }
   0x2   :  { %v24_v1 = vshrl.u32 %v23_v0, 7  ;;  %v29_v2 = vand.u32 127, %v23_v0  ;;  %v19_v12 = vld [vmem:[%s154_s1] sm:$0xff]  ;;  %v18_v15 = vld [vmem:[%s153_s0 + $0x18] sm:$0xff]  ;;  %v20_v19 = vld [vmem:[%s154_s1 + $0x8] sm:$0xff] }
   0x3   :  { %v21_v21 = vld [vmem:[%s154_s1 + $0x10] sm:$0xff]  ;;  %v22_v22 = vld [vmem:[%s154_s1 + $0x18] sm:$0xff] }
   0x4   :  { %v25_v3 = vadd.s32 8, %v24_v1  ;;  %v26_v4 = vadd.s32 16, %v24_v1  ;;  %v27_v5 = vadd.s32 24, %v24_v1  ;;  %v30_v6 = vmul.u32 128, %v24_v1 }
   0x6   :  { %v31_v8 = vmul.u32 128, %v25_v3  ;;  %v32_v9 = vmul.u32 128, %v26_v4  ;;  %v33_v10 = vmul.u32 128, %v27_v5  ;;  %v34_v11 = vadd.s32 %v30_v6, %v29_v2 }
   0x8   :  { %v35_v16 = vadd.s32 %v31_v8, %v29_v2  ;;  %v36_v17 = vadd.s32 %v32_v9, %v29_v2  ;;  %v37_v18 = vadd.s32 %v33_v10, %v29_v2  ;;  %vm38_vm0 = vcmp.lt.s32.totalorder %v34_v11, 2048 }
   0x9   :  { %v42_v20 = vsel %vm38_vm0, %v15_v7, 0.0  ;;  %v46_v23 = vsel %vm38_vm0, %v19_v12, 0.0  ;;  %v50_v24 = vsel %vm38_vm0, %v15_v7, -inf }
   0xa   :  { %vm39_vm1 = vcmp.lt.s32.totalorder %v35_v16, 2048  ;;  %vm40_vm2 = vcmp.lt.s32.totalorder %v36_v17, 2048  ;;  %vm41_vm3 = vcmp.lt.s32.totalorder %v37_v18, 2048  ;;  %v62_v25 = vmul.f32 %v46_v23, %v42_v20 }
   0xb   :  { %v43_v26 = vsel %vm39_vm1, %v16_v13, 0.0  ;;  %v44_v27 = vsel %vm40_vm2, %v17_v14, 0.0  ;;  %v45_v28 = vsel %vm41_vm3, %v18_v15, 0.0  ;;  %v47_v29 = vsel %vm39_vm1, %v20_v19, 0.0 }
   0xc   :  { %v70_v30 = vadd.f32 %v43_v26, %v42_v20  ;;  %v48_v31 = vsel %vm40_vm2, %v21_v21, 0.0  ;;  %v49_v32 = vsel %vm41_vm3, %v22_v22, 0.0  ;;  %v74_v33 = vadd.f32 %v47_v29, %v46_v23 }
   0xd   :  { %v63_v34 = vmul.f32 %v47_v29, %v43_v26  ;;  %v64_v35 = vmul.f32 %v48_v31, %v44_v27  ;;  %v51_v36 = vsel %vm39_vm1, %v16_v13, -inf  ;;  %v52_v39 = vsel %vm40_vm2, %v17_v14, -inf }
   0xe   :  { %v71_v37 = vadd.f32 %v70_v30, %v44_v27  ;;  %v75_v38 = vadd.f32 %v74_v33, %v48_v31  ;;  %v65_v40 = vmul.f32 %v49_v32, %v45_v28  ;;  %v84_v42 = vmax.f32 %v50_v24, %v51_v36 }
   0xf   :  { %v79_v41 = vadd.f32 %v63_v34, %v62_v25  ;;  %v53_v45 = vsel %vm41_vm3, %v18_v15, -inf }
  0x10   :  { %v72_v43 = vadd.f32 %v71_v37, %v45_v28  ;;  %v76_v44 = vadd.f32 %v75_v38, %v49_v32  ;;  %v85_v47 = vmax.f32 %v84_v42, %v52_v39 }
  0x11   :  { %v80_v46 = vadd.f32 %v79_v41, %v64_v35 }
  0x12   :  { %73 = vst [vmem:[%s155_s2] sm:$0xff] %v72_v43  ;;  %v86_v49 = vmax.f32 %v85_v47, %v53_v45 }
  0x13   :  { %93 = vst [vmem:[%s155_s2 + $0x8] sm:$0xff] %v76_v44  ;;  %v81_v48 = vadd.f32 %v80_v46, %v65_v40 }
  0x14   :  { %95 = vst [vmem:[%s155_s2 + $0x18] sm:$0xff] %v86_v49 }
  0x15   :  { %94 = vst [vmem:[%s155_s2 + $0x10] sm:$0xff] %v81_v48 }

</bundles_post_ra>
